<compile_context>
chip_gen: v7x
topology: tpu7x:2x2x1
jax: 0.10.0
libtpu: 0.0.40
codegen_flags: <defaults>
</compile_context>

<pallas_src>
import math
from functools import lru_cache

import jax
import jax.numpy as jnp
from jax.experimental import pallas as pl
from jax.experimental.pallas import tpu as pltpu


_SMALL_INPUT_BYTES = 256 * 1024   # below this, a standalone pallas_call is pure launch overhead


# --------------------------- chip configuration ------------------------------
@lru_cache(maxsize=1)
def _chip_config():
    try:
        kind = jax.devices()[0].device_kind.lower()
    except Exception:
        kind = ""
    is_v7 = "v7" in kind
    # v5e has no bf16 VPU; keep f32 compute there (and whenever detection is unsure).
    bf16_vpu = ("v6" in kind) or is_v7
    if is_v7:
        # v7x: 64 MiB physical VMEM per TensorCore -> leave headroom.
        vmem_limit = 48 * 1024 * 1024
        tile_budget = 24 * 1024 * 1024
    else:
        # v5e / v6e: 128 MiB physical VMEM.
        vmem_limit = 64 * 1024 * 1024
        tile_budget = 32 * 1024 * 1024
    return {
        "is_v7": is_v7,
        "bf16_vpu": bf16_vpu,
        "vmem_limit": vmem_limit,
        "tile_budget": tile_budget,
    }


# ----------------------------- Pallas kernel ---------------------------------
def _scale_kernel(logits_ref, mean_ref, inv_scale_ref, out_ref):
    # (x - mean) * inv_scale; compute dtype == dtype of mean/inv_scale
    # (f32 everywhere except bf16 inputs on v6e/v7x).  Broadcasting handles
    # both the 2-D (B, C) and the 3-D batched (1, B, C) tile layouts.
    x = logits_ref[...].astype(mean_ref.dtype)
    out_ref[...] = ((x - mean_ref[...]) * inv_scale_ref[...]).astype(out_ref.dtype)


# ----------------------------- tiling helpers --------------------------------
def _row_align(in_itemsize, out_itemsize):
    # Sublane alignment depends on dtype packing (f32: 8 rows, bf16: 16, int8: 32).
    return max(8, 32 // min(in_itemsize, out_itemsize))


def _lane_fold(B, C):
    """Smallest g so that g*C is a 128-multiple and g divides B; 1 if none."""
    if C % 128 == 0:
        return 1
    g = 128 // math.gcd(C, 128)
    if g > 1 and B % g == 0 and B // g >= 1:
        return g
    return 1


def _pick_block_b(B, bytes_per_row, row_align, tile_budget, split_for_two_cores):
    """Largest row_align-multiple batch block fitting the byte budget."""
    max_rows = tile_budget // max(bytes_per_row, 1)
    block_b = max(row_align, (max_rows // row_align) * row_align)
    if split_for_two_cores and block_b >= B and B >= 2 * row_align:
        # Keep >=2 grid steps ONLY on v7x so batch blocks shard across both TCs.
        half = -(-((B + 1) // 2) // row_align) * row_align
        block_b = min(block_b, half)
    if block_b >= B:
        return B                                   # full extent: always legal
    return block_b


def _bytes_per_row(C, in_sz, out_sz, compute_sz):
    # Double-buffered in + out tiles, plus one live compute intermediate when upcasting.
    return C * (2 * (in_sz + out_sz) + max(0, compute_sz - in_sz))


# ------------------------- single-model wrapper -------------------------------
def apply_scaling_pallas(logits: jax.Array, mean, scale, *, donate: bool = False) -> jax.Array:
    """(logits - mean) / scale with a Pallas TPU kernel.

    logits: (B, C); mean, scale: (C,) (sklearn scaler mean_ / scale_ attributes).
    """
    B, C = logits.shape
    out_dtype = logits.dtype
    cfg = _chip_config()

    compute_dtype = (jnp.bfloat16
                     if (out_dtype == jnp.bfloat16 and cfg["bf16_vpu"])
                     else jnp.float32)

    mean_f = jnp.asarray(mean, jnp.float32).reshape(C)
    # Reciprocal precomputed once on the tiny (C,) vector; per-element work is a
    # single multiply (sklearn sets scale_=1 for zero-variance features, so this
    # stays finite; a literal zero scale gives inf just like the reference divide).
    inv_f = (1.0 / jnp.asarray(scale, jnp.float32)).reshape(C)

    # Lane-dense view: fold g consecutive rows into the lane axis so the last
    # dim is a 128-multiple (full lane use, unmasked stores).  Free: row-major reshape.
    g = _lane_fold(B, C)
    Bv, Cv = B // g, C * g
    x = logits.reshape(Bv, Cv) if g > 1 else logits
    mean_row = (jnp.tile(mean_f, (g,)) if g > 1 else mean_f).astype(compute_dtype).reshape(1, Cv)
    inv_row = (jnp.tile(inv_f, (g,)) if g > 1 else inv_f).astype(compute_dtype).reshape(1, Cv)

    in_sz = jnp.dtype(logits.dtype).itemsize
    out_sz = jnp.dtype(out_dtype).itemsize
    c_sz = jnp.dtype(compute_dtype).itemsize
    ra = _row_align(in_sz, out_sz)
    per_row = _bytes_per_row(Cv, in_sz, out_sz, c_sz)

    extra = {}
    if donate and out_dtype == logits.dtype:
        extra["input_output_aliases"] = {0: 0}

    if ra * per_row <= cfg["tile_budget"] or Cv % 128 != 0:
        # Common case: full-C rows, tile only the batch axis (contiguous HBM DMA,
        # mean/inv_scale fetched once, fewest grid steps).
        block_b = _pick_block_b(Bv, per_row, ra, cfg["tile_budget"], cfg["is_v7"])
        out = pl.pallas_call(
            _scale_kernel,
            out_shape=jax.ShapeDtypeStruct((Bv, Cv), out_dtype),
            grid_spec=pl.GridSpec(
                grid=(pl.cdiv(Bv, block_b),),
                in_specs=[
                    pl.BlockSpec((block_b, Cv), lambda i: (i, 0)),   # logits tile
                    pl.BlockSpec((1, Cv), lambda i: (0, 0)),         # mean (broadcast over B)
                    pl.BlockSpec((1, Cv), lambda i: (0, 0)),         # inv_scale
                ],
                out_specs=pl.BlockSpec((block_b, Cv), lambda i: (i, 0)),
            ),
            compiler_params=pltpu.CompilerParams(
                dimension_semantics=("parallel",),
                vmem_limit_bytes=cfg["vmem_limit"],
            ),
            **extra,
        )(x, mean_row, inv_row)
    else:
        # Rare huge-C fallback: split the lane axis with a 128-multiple block that
        # divides Cv; batch axis is the fastest-varying grid dim so the mean/
        # inv_scale block index stays constant across consecutive steps.
        block_c = Cv
        for cand in range(Cv // 128, 0, -1):
            bc = cand * 128
            if Cv % bc == 0 and ra * _bytes_per_row(bc, in_sz, out_sz, c_sz) <= cfg["tile_budget"]:
                block_c = bc
                break
        per_row_c = _bytes_per_row(block_c, in_sz, out_sz, c_sz)
        block_b = _pick_block_b(Bv, per_row_c, ra, cfg["tile_budget"], cfg["is_v7"])
        out = pl.pallas_call(
            _scale_kernel,
            out_shape=jax.ShapeDtypeStruct((Bv, Cv), out_dtype),
            grid_spec=pl.GridSpec(
                grid=(Cv // block_c, pl.cdiv(Bv, block_b)),
                in_specs=[
                    pl.BlockSpec((block_b, block_c), lambda j, i: (i, j)),
                    pl.BlockSpec((1, block_c), lambda j, i: (0, j)),
                    pl.BlockSpec((1, block_c), lambda j, i: (0, j)),
                ],
                out_specs=pl.BlockSpec((block_b, block_c), lambda j, i: (i, j)),
            ),
            compiler_params=pltpu.CompilerParams(
                dimension_semantics=("arbitrary", "arbitrary"),
                vmem_limit_bytes=cfg["vmem_limit"],
            ),
            **extra,
        )(x, mean_row, inv_row)

    return out.reshape(B, C) if g > 1 else out


# -------------------------- fused multi-model wrapper -------------------------
def apply_scaling_pallas_batched(logits_stack: jax.Array, means, scales) -> jax.Array:
    """Scale M models' logits in ONE pallas_call.

    logits_stack: (M, B, C); means, scales: (M, C).
    """
    M, B, C = logits_stack.shape
    out_dtype = logits_stack.dtype
    cfg = _chip_config()

    compute_dtype = (jnp.bfloat16
                     if (out_dtype == jnp.bfloat16 and cfg["bf16_vpu"])
                     else jnp.float32)

    means_f = jnp.asarray(means, jnp.float32).reshape(M, C)
    inv_f = (1.0 / jnp.asarray(scales, jnp.float32)).reshape(M, C)

    g = _lane_fold(B, C)
    Bv, Cv = B // g, C * g
    x = logits_stack.reshape(M, Bv, Cv) if g > 1 else logits_stack
    mean_rows = (jnp.tile(means_f, (1, g)) if g > 1 else means_f
                 ).astype(compute_dtype).reshape(M, 1, Cv)
    inv_rows = (jnp.tile(inv_f, (1, g)) if g > 1 else inv_f
                ).astype(compute_dtype).reshape(M, 1, Cv)

    in_sz = jnp.dtype(out_dtype).itemsize
    c_sz = jnp.dtype(compute_dtype).itemsize
    ra = _row_align(in_sz, in_sz)
    per_row = _bytes_per_row(Cv, in_sz, in_sz, c_sz)

    # The model axis is already a parallel grid dim, so only split the batch
    # axis for the 2 v7x TensorCores when there is a single model.
    block_b = _pick_block_b(Bv, per_row, ra, cfg["tile_budget"],
                            cfg["is_v7"] and M == 1)

    out = pl.pallas_call(
        _scale_kernel,
        out_shape=jax.ShapeDtypeStruct((M, Bv, Cv), out_dtype),
        grid_spec=pl.GridSpec(
            grid=(M, pl.cdiv(Bv, block_b)),
            in_specs=[
                pl.BlockSpec((1, block_b, Cv), lambda m, i: (m, i, 0)),  # logits
                pl.BlockSpec((1, 1, Cv), lambda m, i: (m, 0, 0)),        # mean
                pl.BlockSpec((1, 1, Cv), lambda m, i: (m, 0, 0)),        # inv_scale
            ],
            out_specs=pl.BlockSpec((1, block_b, Cv), lambda m, i: (m, i, 0)),
        ),
        compiler_params=pltpu.CompilerParams(
            dimension_semantics=("parallel", "parallel"),
            vmem_limit_bytes=cfg["vmem_limit"],
        ),
    )(x, mean_rows, inv_rows)

    return out.reshape(M, B, C) if g > 1 else out


# ----------------------- BaseEnsembleFunction (JAX) ---------------------------
class BaseEnsembleFunctionPallas:
    """JAX/Pallas port of BaseEnsembleFunction.

    `logits_scalers` is a dict: model_name -> (mean_, scale_) arrays of shape
    (C,), mirroring fitted sklearn StandardScaler / MinMaxScaler attributes.
    """

    def __init__(self, logits_scalers=None):
        self._logits_scalers = logits_scalers

    def forward(self, input, models):
        # TODO(synk): forward is @abstractmethod in the reference module; the
        # combination strategy is defined only by concrete subclasses.
        raise NotImplementedError

    def _apply_scaling(self, logits: jax.Array, model_name: str) -> jax.Array:
        if self._logits_scalers and model_name in self._logits_scalers:
            mean, scale = self._logits_scalers[model_name]
            n_bytes = logits.size * jnp.dtype(logits.dtype).itemsize
            if n_bytes < _SMALL_INPUT_BYTES:
                # Tiny tensors: standalone pallas_call is pure launch overhead;
                # let XLA fuse the elementwise expression instead.
                mean_f = jnp.asarray(mean, jnp.float32)
                scale_f = jnp.asarray(scale, jnp.float32)
                scaled = (logits.astype(jnp.float32) - mean_f) / scale_f
                return scaled.astype(logits.dtype)
            return apply_scaling_pallas(logits, mean, scale)
        return logits

    def _apply_scaling_all(self, logits_by_model: dict) -> dict:
        """Scale a whole ensemble's logits; models sharing (shape, dtype) are
        stacked into one fused pallas_call.  Models without a fitted scaler
        pass through unchanged (reference semantics)."""
        out = dict(logits_by_model)
        if not self._logits_scalers:
            return out
        groups = {}
        for name, lg in logits_by_model.items():
            if name in self._logits_scalers and lg.ndim == 2:
                groups.setdefault((lg.shape, jnp.dtype(lg.dtype)), []).append(name)
            elif name in self._logits_scalers:
                out[name] = self._apply_scaling(lg, name)   # non-2D: per-model path
        for (_, _), names in groups.items():
            stack = jnp.stack([logits_by_model[n] for n in names], axis=0)
            means = jnp.stack([jnp.asarray(self._logits_scalers[n][0], jnp.float32)
                               for n in names], axis=0)
            scales = jnp.stack([jnp.asarray(self._logits_scalers[n][1], jnp.float32)
                                for n in names], axis=0)
            scaled = apply_scaling_pallas_batched(stack, means, scales)
            for k, n in enumerate(names):
                out[n] = scaled[k]
        return out


# --------------------------------- demo ---------------------------------------
if __name__ == "__main__":
    key = jax.random.PRNGKey(0)
    k = jax.random.split(key, 9)

    # Case A: f32, C not 128-aligned -> lane-dense fold (8, 32) -> (2, 128).
    B1, C1 = 8, 32
    logits_a = jax.random.normal(k[0], (B1, C1), dtype=jnp.float32) * 3.0 + 1.5
    mean_a = jax.random.normal(k[1], (C1,), dtype=jnp.float32)
    scale_a = jax.random.uniform(k[2], (C1,), dtype=jnp.float32, minval=0.5, maxval=2.0)

    # Case B: bf16, lane-dense 128-wide rows (bf16 compute on v6e/v7x, f32 on v5e).
    B2, C2 = 32, 128
    logits_b = (jax.random.normal(k[3], (B2, C2), dtype=jnp.float32) * 2.0).astype(jnp.bfloat16)
    mean_b = jax.random.normal(k[4], (C2,), dtype=jnp.float32)
    scale_b = jax.random.uniform(k[5], (C2,), dtype=jnp.float32, minval=0.5, maxval=2.0)

    out_a = jax.block_until_ready(apply_scaling_pallas(logits_a, mean_a, scale_a))
    out_b = jax.block_until_ready(apply_scaling_pallas(logits_b, mean_b, scale_b))

    ref_a = (logits_a - mean_a[None, :]) / scale_a[None, :]
    ref_b = ((logits_b.astype(jnp.float32) - mean_b[None, :]) / scale_b[None, :]
             ).astype(jnp.bfloat16)

    assert out_a.dtype == jnp.float32 and out_b.dtype == jnp.bfloat16
    assert jnp.allclose(out_a, ref_a, atol=1e-5, rtol=1e-5), "f32 scaling mismatch"
    assert jnp.allclose(out_b.astype(jnp.float32), ref_b.astype(jnp.float32),
                        atol=5e-2, rtol=5e-2), "bf16 scaling mismatch"

    # Case C: fused multi-model call (M=3 models, batch 16, 32 classes).
    M, B3, C3 = 3, 16, 32
    logits_c = jax.random.normal(k[6], (M, B3, C3), dtype=jnp.float32)
    means_c = jax.random.normal(k[7], (M, C3), dtype=jnp.float32)
    scales_c = jax.random.uniform(k[8], (M, C3), dtype=jnp.float32, minval=0.5, maxval=2.0)

    out_c = jax.block_until_ready(apply_scaling_pallas_batched(logits_c, means_c, scales_c))
    ref_c = (logits_c - means_c[:, None, :]) / scales_c[:, None, :]
    assert jnp.allclose(out_c, ref_c, atol=1e-5, rtol=1e-5), "batched scaling mismatch"

    # Class-level dispatch: two models with scalers (one fused call), one pass-through.
    ens = BaseEnsembleFunctionPallas(logits_scalers={
        "m0": (means_c[0], scales_c[0]),
        "m1": (means_c[1], scales_c[1]),
    })
    per_model = {"m0": logits_c[0], "m1": logits_c[1], "m2": logits_c[2]}
    fused = ens._apply_scaling_all(per_model)
    jax.block_until_ready(fused)
    assert jnp.allclose(fused["m0"], ref_c[0], atol=1e-5, rtol=1e-5), "fused m0 mismatch"
    assert jnp.allclose(fused["m1"], ref_c[1], atol=1e-5, rtol=1e-5), "fused m1 mismatch"
    assert jnp.array_equal(fused["m2"], logits_c[2]), "pass-through mismatch"

    small = ens._apply_scaling(logits_c[0], "m0")        # tiny -> fused XLA path
    passthru = ens._apply_scaling(logits_c[2], "nope")   # no scaler -> identity
    jax.block_until_ready((small, passthru))
    assert jnp.allclose(small, ref_c[0], atol=1e-5, rtol=1e-5), "dispatch mismatch"
    assert jnp.array_equal(passthru, logits_c[2]), "passthrough mismatch"

    print("KERNEL_OK")
</pallas_src>

<mosaic_0001>
module attributes {stable_mosaic.version = 11 : i64} {
  func.func @_scale_kernel(%arg0: i32, %arg1: memref<2x128xf32, #tpu.memory_space<vmem>>, %arg2: memref<1x128xf32, #tpu.memory_space<vmem>>, %arg3: memref<1x128xf32, #tpu.memory_space<vmem>>, %arg4: memref<2x128xf32, #tpu.memory_space<vmem>>) attributes {dimension_semantics = [#tpu.dimension_semantics<parallel>], iteration_bounds = array<i64: 1>, scalar_prefetch = 0 : i64, scratch_operands = 0 : i64, tpu.core_type = #tpu.core_type<tc>, window_params = [{transform_indices = @transform_0, window_bounds = array<i64: 2, 128>}, {pipeline_mode = #tpu.pipeline_mode<synchronous>, transform_indices = @transform_1, window_bounds = array<i64: 1, 128>}, {pipeline_mode = #tpu.pipeline_mode<synchronous>, transform_indices = @transform_2, window_bounds = array<i64: 1, 128>}, {transform_indices = @transform_3, window_bounds = array<i64: 2, 128>}]} {
    %c0 = arith.constant 0 : index
    %c0_0 = arith.constant 0 : index
    %0 = vector.load %arg1[%c0, %c0_0] : memref<2x128xf32, #tpu.memory_space<vmem>>, vector<2x128xf32>
    %c0_1 = arith.constant 0 : index
    %c0_2 = arith.constant 0 : index
    %1 = vector.load %arg2[%c0_1, %c0_2] : memref<1x128xf32, #tpu.memory_space<vmem>>, vector<1x128xf32>
    %2 = vector.broadcast %1 : vector<1x128xf32> to vector<2x128xf32>
    %3 = arith.subf %0, %2 : vector<2x128xf32>
    %c0_3 = arith.constant 0 : index
    %c0_4 = arith.constant 0 : index
    %4 = vector.load %arg3[%c0_3, %c0_4] : memref<1x128xf32, #tpu.memory_space<vmem>>, vector<1x128xf32>
    %5 = vector.broadcast %4 : vector<1x128xf32> to vector<2x128xf32>
    %6 = arith.mulf %3, %5 : vector<2x128xf32>
    %c0_5 = arith.constant 0 : index
    %c0_6 = arith.constant 0 : index
    %7 = vector.load %arg4[%c0_5, %c0_6] : memref<2x128xf32, #tpu.memory_space<vmem>>, vector<2x128xf32>
    tpu.vector_store %arg4[%c0_5, %c0_6], %6 {strides = array<i32>} : memref<2x128xf32, #tpu.memory_space<vmem>>, vector<2x128xf32>,
    return
  }
  func.func @transform_0(%arg0: i32) -> (i32, i32) {
    %c0_i32 = arith.constant 0 : i32
    %c0_i32_0 = arith.constant 0 : i32
    return %arg0, %c0_i32 : i32, i32
  }
  func.func @transform_1(%arg0: i32) -> (i32, i32) {
    %c0_i32 = arith.constant 0 : i32
    %c0_i32_0 = arith.constant 0 : i32
    %c0_i32_1 = arith.constant 0 : i32
    return %c0_i32, %c0_i32_0 : i32, i32
  }
  func.func @transform_2(%arg0: i32) -> (i32, i32) {
    %c0_i32 = arith.constant 0 : i32
    %c0_i32_0 = arith.constant 0 : i32
    %c0_i32_1 = arith.constant 0 : i32
    return %c0_i32, %c0_i32_0 : i32, i32
  }
  func.func @transform_3(%arg0: i32) -> (i32, i32) {
    %c0_i32 = arith.constant 0 : i32
    %c0_i32_0 = arith.constant 0 : i32
    return %arg0, %c0_i32 : i32, i32
  }
}

</mosaic_0001>

<bundles_post_ra>
// kernel: tpu_custom_call.1
= control target key start
LH: loop header
LB: loop body
LE: loop exit
PB: predicated region body
PF: predicated region fallthrough
CT: control target
= control target key end

     0   :  { %8 = vsyncpa [#allocation3], 0  ;;  %s256_s0 = inlined_call_operand.hbm [shape: f32[2,128], index: 0, kind: input, shape index: {}]   ;;  %s257_s1 = inlined_call_operand.hbm [shape: f32[1,128], index: 1, kind: input, shape index: {}]   ;;  %s258_s2 = inlined_call_operand.hbm [shape: f32[1,128], index: 2, kind: input, shape index: {}]   ;;  %s259_s3 = inlined_call_operand.hbm [shape: f32[2,128], index: 3, kind: output, shape index: {}]  }
   0x1   :  { %9 = vsyncpa [#allocation6], 0 }
   0x2   :  { %10 = vsyncpa [#allocation4], 0  ;;  %s184_s12 = smov [#allocation5]   ;;  %s185_s14 = smov [#allocation2]  }
   0x3   :  { %s27_s13 = sshll.u32 %s184_s12, 4  ;;  %s17_s15 = sshll.u32 %s185_s14, 4  ;;  %s28_s13 = int_to_ptr.vmem [resolvable:$true] %s27_s13  ;;  %s18_s15 = int_to_ptr.vmem [resolvable:$true] %s17_s15 }
   0x4   :  { %s90_s18 = scalar_lea.hbm %s257_s1, 16 }
   0x5   :  { %p91_p0 = scmp.ne.s32.totalorder %s257_s1, %s90_s18  ;;  %p94_p1 = scmp.lt.u32.totalorder %s90_s18, %s257_s1 }
   0x7   :  { %p96_p2 = pnand %p94_p1, %p91_p0 }
   0x9   :  { %99 = shalt.err (!%p96_p2)
}
   0xa   :  { %s100_s23 = scalar_lea.vmem %s28_s13, 16  ;;  %s104_s24 = scalar_lea.vmem %s28_s13, 32 }
   0xb   :  { %p101_p3 = scmp.ne.s32.totalorder %s28_s13, %s100_s23  ;;  %p105_p4 = scmp.lt.s32.totalorder %s28_s13, %s28_s13 }
   0xc   :  { %p106_p5 = scmp.lt.s32.totalorder %s104_s24, %s100_s23 }
   0xe   :  { %p107_p6 = por %p106_p5, %p105_p4 }
  0x10   :  { %p108_p7 = pnand %p107_p6, %p101_p3 }
  0x12   :  { %111 = shalt.err (!%p108_p7)
}
  0x13   :  { %30 = dma.hbm_to_vmem [thread:$0]  %s257_s1, 16, %s28_s13, [#allocation6]  }
  0x14   :  { %s112_s29 = scalar_lea.hbm %s256_s0, 32 }
  0x15   :  { %p113_p8 = scmp.ne.s32.totalorder %s256_s0, %s112_s29  ;;  %p116_p9 = scmp.lt.u32.totalorder %s112_s29, %s256_s0 }
  0x17   :  { %p118_p10 = pnand %p116_p9, %p113_p8 }
  0x19   :  { %121 = shalt.err (!%p118_p10)
}
  0x1a   :  { %s122_s7 = scalar_lea.vmem %s18_s15, 32  ;;  %p127_p12 = scmp.lt.s32.totalorder %s18_s15, %s18_s15 }
  0x1b   :  { %p123_p11 = scmp.ne.s32.totalorder %s18_s15, %s122_s7  ;;  %p128_p13 = scmp.lt.s32.totalorder %s122_s7, %s122_s7 }
  0x1d   :  { %p129_p0 = por %p128_p13, %p127_p12 }
  0x1f   :  { %p130_p1 = pnand %p129_p0, %p123_p11 }
  0x21   :  { %133 = shalt.err (!%p130_p1)
}
  0x22   :  { %20 = dma.hbm_to_vmem [thread:$0]  %s256_s0, 32, %s18_s15, [#allocation3]  }
  0x23   :  { %s186_s9 = smov [#allocation7]   ;;  %s134_s13 = scalar_lea.hbm %s258_s2, 16 }
  0x24   :  { %s37_s10 = sshll.u32 %s186_s9, 4  ;;  %p135_p2 = scmp.ne.s32.totalorder %s258_s2, %s134_s13  ;;  %s38_s10 = int_to_ptr.vmem [resolvable:$true] %s37_s10 }
  0x25   :  { %p138_p3 = scmp.lt.u32.totalorder %s134_s13, %s258_s2 }
  0x27   :  { %p140_p4 = pnand %p138_p3, %p135_p2 }
  0x29   :  { %143 = shalt.err (!%p140_p4)
}
  0x2a   :  { %s144_s19 = scalar_lea.vmem %s38_s10, 16  ;;  %s148_s0 = scalar_lea.vmem %s38_s10, 32 }
  0x2b   :  { %p145_p5 = scmp.ne.s32.totalorder %s38_s10, %s144_s19  ;;  %p149_p6 = scmp.lt.s32.totalorder %s38_s10, %s38_s10 }
  0x2c   :  { %p150_p7 = scmp.lt.s32.totalorder %s148_s0, %s144_s19 }
  0x2e   :  { %p151_p8 = por %p150_p7, %p149_p6 }
  0x30   :  { %p152_p9 = pnand %p151_p8, %p145_p5 }
  0x32   :  { %155 = shalt.err (!%p152_p9)
}
  0x33   :  { %40 = dma.hbm_to_vmem [thread:$0]  %s258_s2, 16, %s38_s10, [#allocation6]  }
  0x34   :  { %178 = dma.done.wait [#allocation3], 32  }
  0x35   :  { %179 = vsyncadd [#allocation3], 4294967264 }
  0x36   :  { %180 = dma.done.wait [#allocation6], 32  }
  0x37   :  { %181 = vsyncadd [#allocation6], 4294967264  ;;  %s187_s21 = smov [#allocation8]   ;;  %v50_v0 = vld [vmem:[#allocation2] sm:$0x3] }
  0x38   :  { %s74_s22 = sshll.u32 %s187_s21, 4  ;;  %v84_v1 = vld [vmem:[#allocation5] ss:$0 sm:$0xff]  ;;  %v85_v2 = vld [vmem:[#allocation7] ss:$0 sm:$0xff]  ;;  %s75_s22 = int_to_ptr.vmem [resolvable:$true] %s74_s22 }
  0x39   :  { %v58_v3 = vsub.f32 %v50_v0, %v84_v1  ;;  %s156_s23 = scalar_lea.vmem %s75_s22, 32  ;;  %p161_p11 = scmp.lt.s32.totalorder %s75_s22, %s75_s22 }
  0x3a   :  { %p157_p10 = scmp.ne.s32.totalorder %s75_s22, %s156_s23  ;;  %p162_p12 = scmp.lt.s32.totalorder %s156_s23, %s156_s23 }
  0x3b   :  { %v66_v4 = vmul.f32 %v85_v2, %v58_v3 }
  0x3c   :  { %p163_p13 = por %p162_p12, %p161_p11 }
  0x3d   :  { %67 = vst [vmem:[#allocation8] sm:$0x3] %v66_v4 }
  0x3e   :  { %p164_p0 = pnand %p163_p13, %p157_p10 }
  0x40   :  { %167 = shalt.err (!%p164_p0)
}
  0x41   :  { %s168_s25 = scalar_lea.hbm %s259_s3, 32 }
  0x42   :  { %p169_p1 = scmp.ne.s32.totalorder %s259_s3, %s168_s25  ;;  %p172_p2 = scmp.lt.u32.totalorder %s168_s25, %s259_s3 }
  0x44   :  { %p174_p3 = pnand %p172_p2, %p169_p1 }
  0x46   :  { %177 = shalt.err (!%p174_p3)
}
  0x47   :  { %77 = dma.vmem_to_hbm [thread:$0]  %s75_s22, 32, %s259_s3, [#allocation4]  }
  0x48   :  { %182 = dma.done.wait [#allocation4], 32  }
  0x49   :  { %183 = vsyncadd [#allocation4], 4294967264 }
  0x4a   :  { %81 = vsyncpa [#allocation3], 1 }
  0x4b   :  { %82 = vsyncpa [#allocation6], 1 }
  0x4c   :  { %83 = vsyncpa [#allocation4], 1 }

</bundles_post_ra>
